<compile_context>
chip_gen: v5e
topology: v5e:2x2
jax: 0.10.0
libtpu: 0.0.40
codegen_flags: <defaults>
</compile_context>

<pallas_src>
import functools

import jax
import jax.numpy as jnp
from jax.experimental import pallas as pl
from jax.experimental.pallas import tpu as pltpu


def _round_up(x, m):
    return (x + m - 1) // m * m


def _cdiv(a, b):
    return (a + b - 1) // b


def _default_num_partials():
    # v7x has 2 TensorCores per chip (outer "parallel" grid axis is sharded
    # across them); v5e/v6e have a single TC where extra partials only add
    # a little padding and an extra epilogue.
    try:
        kind = jax.devices()[0].device_kind.lower()
    except Exception:
        return 1
    return 2 if "v7" in kind else 1


def _make_kernel(block_rows, lane, valid_rows, tiles_per_partial, needs_mask):
    sub_groups = block_rows // 8

    def kernel(x_ref, out_ref, acc_ref):
        p = pl.program_id(0)
        t = pl.program_id(1)

        @pl.when(t == 0)
        def _():
            acc_ref[...] = jnp.zeros_like(acc_ref)

        x = x_ref[...].astype(jnp.float32)                  # (block_rows, lane)

        if needs_mask:
            # The last block of the stream may be partially out of bounds (and
            # with P > 1 a trailing block may be a clamped duplicate). Mask
            # invalid rows using only program ids, never the DMA'd data, and
            # mask x BEFORE squaring so garbage NaN/Inf cannot propagate.
            row0 = (p * tiles_per_partial + t) * block_rows
            row = row0 + jax.lax.broadcasted_iota(jnp.int32, x.shape, 0)
            x = jnp.where(row < valid_rows, x, 0.0)

        sq = x * x
        # Per step: only vreg-aligned VPU adds into the (8, lane) accumulator;
        # the single cross-lane/sublane reduce happens once in the epilogue.
        acc_ref[...] += sq.reshape(sub_groups, 8, lane).sum(axis=0)

        @pl.when(t == pl.num_programs(1) - 1)
        def _():
            out_ref[...] = jnp.broadcast_to(jnp.sum(acc_ref[...]), (1, 1))

    return kernel


@functools.partial(
    jax.jit,
    static_argnames=("num_partials", "target_block_bytes", "block_rows"))
def _squared_loss_impl(outputs, targets, *, num_partials, target_block_bytes,
                       block_rows):
    N, C = outputs.shape
    tgt = targets.reshape(N).astype(jnp.int32)
    total = N * C
    itemsize = jnp.dtype(outputs.dtype).itemsize

    # ---- correction term: touches only N elements, done with plain XLA ------
    picked = jnp.take_along_axis(outputs, tgt[:, None], axis=1)
    corr = jnp.sum(picked.astype(jnp.float32))

    # ---- lane-dense view of the big tensor (no data movement) ---------------
    if total % 128 == 0:
        lane = 128
        rows = total // 128
        x2d = outputs.reshape(rows, lane)        # free reshape (row-major)
    else:
        # TODO(synk): N*C not a multiple of 128 -> lane-sparse fallback
        # (lane = C); HBM traffic is unchanged but VMEM tiles are only
        # C/round_up(C,128) dense, so per-step overhead rises for small odd C.
        lane = C
        rows = N
        x2d = outputs

    lane_padded = _round_up(lane, 128)

    # ---- tiling, sized from the real input dtype -----------------------------
    sub_mult = max(8, 32 // itemsize)            # f32: 8, bf16: 16, int8: 32
    if block_rows is None:
        cap = max(sub_mult,
                  (target_block_bytes // (lane_padded * itemsize))
                  // sub_mult * sub_mult)
        block_rows = int(min(_round_up(rows, sub_mult), cap))
    assert block_rows >= 8 and block_rows % sub_mult == 0, \
        "block_rows must be a positive multiple of the sublane packing"

    if rows < block_rows:
        # Whole problem fits in a single (<= target_block_bytes) block: padding
        # this tiny array is cheaper than anything else.  The big-tensor path
        # (rows >= block_rows) never copies `outputs`.
        x2d = jnp.pad(x2d, ((0, block_rows - rows), (0, 0)))
        arr_rows = block_rows
    else:
        arr_rows = rows

    nblocks = _cdiv(arr_rows, block_rows)
    P = max(1, min(num_partials, nblocks))       # parallel partial sums
    T = _cdiv(nblocks, P)                        # tiles per partial
    needs_mask = (arr_rows % block_rows != 0) or (P * T != nblocks)

    kernel = _make_kernel(block_rows, lane, arr_rows, T, needs_mask)

    block_bytes = block_rows * lane_padded * itemsize
    vmem_needed = 2 * block_bytes + 8 * lane_padded * 4 + (1 << 16)
    vmem_limit = int(min(48 << 20, max(32 << 20, vmem_needed + (4 << 20))))

    last_block = nblocks - 1

    partials = pl.pallas_call(
        kernel,
        out_shape=jax.ShapeDtypeStruct((P, 1), jnp.float32),
        grid=(P, T),
        in_specs=[
            # Clamp so an over-count trailing block (possible when P*T >
            # nblocks) re-reads the last valid block; its contribution is
            # masked to zero inside the kernel.
            pl.BlockSpec((block_rows, lane),
                         lambda p, t: (jnp.minimum(p * T + t, last_block), 0)),
        ],
        out_specs=pl.BlockSpec((1, 1), lambda p, t: (p, 0)),
        scratch_shapes=[pltpu.VMEM((8, lane), jnp.float32)],
        compiler_params=pltpu.CompilerParams(
            dimension_semantics=("parallel", "arbitrary"),
            vmem_limit_bytes=vmem_limit,
        ),
    )(x2d)

    ssq = jnp.sum(partials)
    # Note: mild f32 cancellation is possible when sum(x^2) is huge and the
    # loss is tiny; everything is accumulated in f32.
    return ssq - 2.0 * corr + jnp.float32(N)


def squared_loss(outputs, targets, *, num_partials=None,
                 target_block_bytes=8 * 1024 * 1024, block_rows=None):
    """outputs: (N, C) float, targets: (N,) int class indices -> scalar f32."""
    if num_partials is None:
        num_partials = _default_num_partials()
    return _squared_loss_impl(outputs, targets, num_partials=num_partials,
                              target_block_bytes=target_block_bytes,
                              block_rows=block_rows)


def squared_loss_ref(outputs, targets):
    one_hot = jax.nn.one_hot(targets, outputs.shape[1], dtype=jnp.float32)
    return jnp.sum((outputs.astype(jnp.float32) - one_hot) ** 2)


if __name__ == "__main__":
    key = jax.random.PRNGKey(0)

    def check(N, C, **kw):
        k1, k2 = jax.random.split(jax.random.fold_in(key, N * 1000 + C))
        outputs = jax.random.normal(k1, (N, C), dtype=jnp.float32)
        targets = jax.random.randint(k2, (N,), 0, C, dtype=jnp.int32)
        loss = squared_loss(outputs, targets, **kw)
        jax.block_until_ready(loss)
        ref = squared_loss_ref(outputs, targets)
        assert jnp.allclose(loss, ref, rtol=1e-5, atol=1e-3), (N, C, loss, ref)

    # Small example consistent with the module (batch=8, classes=32):
    # lane-dense flattened path, single (padded-tiny) block.
    check(8, 32)
    # C a multiple of 128.
    check(16, 256)
    # Odd C but N*C % 128 == 0: still fully lane-dense via flattening.
    check(8, 48)
    # Awkward N*C (not a multiple of 128): lane-sparse fallback path.
    check(10, 10)
    # Multi-tile accumulation, no masking needed (exact block division).
    check(1024, 32, block_rows=64, num_partials=2)
    # Ragged row count: partial last block handled by the in-kernel mask.
    check(1000, 32, block_rows=64)
    # Ragged + 3 partials: exercises clamped duplicate block + mask.
    check(1000, 32, block_rows=64, num_partials=3)

    print("KERNEL_OK")
</pallas_src>

<mosaic_0001>
module attributes {stable_mosaic.version = 11 : i64} {
  func.func @kernel(%arg0: i32, %arg1: i32, %arg2: memref<8x128xf32, #tpu.memory_space<vmem>>, %arg3: memref<1x1xf32, #tpu.memory_space<vmem>>, %arg4: memref<8x128xf32, #tpu.memory_space<vmem>>) attributes {dimension_semantics = [#tpu.dimension_semantics<parallel>, #tpu.dimension_semantics<arbitrary>], iteration_bounds = array<i64: 1, 1>, scalar_prefetch = 0 : i64, scratch_operands = 1 : i64, tpu.core_type = #tpu.core_type<tc>, window_params = [{transform_indices = @transform_0, window_bounds = array<i64: 8, 128>}, {transform_indices = @transform_1, window_bounds = array<i64: 1, 1>}]} {
    %c0_i32 = arith.constant 0 : i32
    %0 = arith.cmpi eq, %arg1, %c0_i32 : i32
    %1 = arith.extui %0 : i1 to i32
    %c0_i32_0 = arith.constant 0 : i32
    %2 = arith.cmpi ne, %1, %c0_i32_0 : i32
    scf.if %2 {
      %cst_8 = arith.constant 0.000000e+00 : f32
      %13 = vector.broadcast %cst_8 : f32 to vector<8x128xf32>
      %c0_9 = arith.constant 0 : index
      %c0_10 = arith.constant 0 : index
      %14 = vector.load %arg4[%c0_9, %c0_10] : memref<8x128xf32, #tpu.memory_space<vmem>>, vector<8x128xf32>
      tpu.vector_store %arg4[%c0_9, %c0_10], %13 {strides = array<i32>} : memref<8x128xf32, #tpu.memory_space<vmem>>, vector<8x128xf32>,
    } else {
    }
    %c0 = arith.constant 0 : index
    %c0_1 = arith.constant 0 : index
    %3 = vector.load %arg2[%c0, %c0_1] : memref<8x128xf32, #tpu.memory_space<vmem>>, vector<8x128xf32>
    %4 = arith.mulf %3, %3 : vector<8x128xf32>
    %c0_2 = arith.constant 0 : index
    %c0_3 = arith.constant 0 : index
    %5 = vector.load %arg4[%c0_2, %c0_3] : memref<8x128xf32, #tpu.memory_space<vmem>>, vector<8x128xf32>
    %6 = vector.shape_cast %4 : vector<8x128xf32> to vector<1x8x128xf32>
    %cst = arith.constant dense<0.000000e+00> : vector<8x128xf32>
    %7 = vector.multi_reduction <add>, %6, %cst [0] : vector<1x8x128xf32> to vector<8x128xf32>
    %8 = arith.addf %5, %7 : vector<8x128xf32>
    %c0_4 = arith.constant 0 : index
    %c0_5 = arith.constant 0 : index
    %9 = vector.load %arg4[%c0_4, %c0_5] : memref<8x128xf32, #tpu.memory_space<vmem>>, vector<8x128xf32>
    tpu.vector_store %arg4[%c0_4, %c0_5], %8 {strides = array<i32>} : memref<8x128xf32, #tpu.memory_space<vmem>>, vector<8x128xf32>,
    %c0_i32_6 = arith.constant 0 : i32
    %10 = arith.cmpi eq, %arg1, %c0_i32_6 : i32
    %11 = arith.extui %10 : i1 to i32
    %c0_i32_7 = arith.constant 0 : i32
    %12 = arith.cmpi ne, %11, %c0_i32_7 : i32
    scf.if %12 {
      %c0_8 = arith.constant 0 : index
      %c0_9 = arith.constant 0 : index
      %13 = vector.load %arg4[%c0_8, %c0_9] : memref<8x128xf32, #tpu.memory_space<vmem>>, vector<8x128xf32>
      %14 = vector.shape_cast %13 : vector<8x128xf32> to vector<1x8x128xf32>
      %cst_10 = arith.constant dense<0.000000e+00> : vector<1xf32>
      %15 = vector.multi_reduction <add>, %14, %cst_10 [1, 2] : vector<1x8x128xf32> to vector<1xf32>
      %16 = vector.shape_cast %15 : vector<1xf32> to vector<1x1x1xf32>
      %17 = vector.extract %16[0, 0, 0] : f32 from vector<1x1x1xf32>
      %18 = vector.broadcast %17 : f32 to vector<1x1xf32>
      %c0_11 = arith.constant 0 : index
      %c0_12 = arith.constant 0 : index
      %19 = vector.load %arg3[%c0_11, %c0_12] : memref<1x1xf32, #tpu.memory_space<vmem>>, vector<1x1xf32>
      tpu.vector_store %arg3[%c0_11, %c0_12], %18 {strides = array<i32>} : memref<1x1xf32, #tpu.memory_space<vmem>>, vector<1x1xf32>,
    } else {
    }
    return
  }
  func.func @transform_0(%arg0: i32, %arg1: i32) -> (i32, i32) {
    %c1_i32 = arith.constant 1 : i32
    %0 = arith.muli %arg0, %c1_i32 : i32
    %1 = arith.addi %0, %arg1 : i32
    %c0_i32 = arith.constant 0 : i32
    %2 = arith.minsi %1, %c0_i32 : i32
    %c0_i32_0 = arith.constant 0 : i32
    %c0_i32_1 = arith.constant 0 : i32
    return %2, %c0_i32_0 : i32, i32
  }
  func.func @transform_1(%arg0: i32, %arg1: i32) -> (i32, i32) {
    %c0_i32 = arith.constant 0 : i32
    %c0_i32_0 = arith.constant 0 : i32
    return %arg0, %c0_i32 : i32, i32
  }
}

</mosaic_0001>

<bundles_post_ra>
// kernel: _squared_loss_impl.1
= control target key start
LH: loop header
LB: loop body
LE: loop exit
PB: predicated region body
PF: predicated region fallthrough
CT: control target
= control target key end

     0   :  { %s131_s0 = inlined_call_operand.vmem [shape: f32[8,128], index: 0, kind: input, shape index: {}]   ;;  %s132_s1 = inlined_call_operand.hbm [shape: f32[1,1], index: 1, kind: output, shape index: {}]  }
   0x1   :  { %v41_v0 = vld [vmem:[%s131_s0] sm:$0xff] }
   0x2   :  { %6 = vsyncpa [#allocation4], 0  ;;  %v42_v1 = vmul.f32 %v41_v0, %v41_v0  ;;  %s114_s8 = smov [#allocation3]   ;;  %s70_s12 = sshll.u32 %s132_s1, 4  ;;  %vm61_vm0 = vcmask 0   ;;  %s71_s12 = int_to_ptr.hbm [resolvable:$true] %s70_s12 }
   0x3   :  { %s68_s9 = sshll.u32 %s114_s8, 4  ;;  %s69_s9 = int_to_ptr.vmem [resolvable:$true] %s68_s9 }
   0x4   :  { %51 = vadd.xlane.f32.xlu0 %v42_v1 }
  0x77   :  { %v52_v2 = vpop.xlane.xlu0 %51 }
  0x78   :  { %v53_v3 = vrot.slane %v52_v2, 4 }
  0x7a   :  { %v54_v4 = vadd.f32 %v53_v3, %v52_v2 }
  0x7c   :  { %v55_v5 = vrot.slane %v54_v4, 2 }
  0x7e   :  { %v56_v6 = vadd.f32 %v55_v5, %v54_v4 }
  0x80   :  { %v57_v7 = vrot.slane %v56_v6, 1 }
  0x82   :  { %v58_v8 = vadd.f32 %v57_v7, %v56_v6 }
  0x84   :  { %85 = vpush %v58_v8 }
  0xb5   :  { %s86_s0 = spop %85 }
  0xb6   :  { %v60_v9 = vstv %s86_s0 }
  0xb7   :  { %62 = vst.msk [vmem:[#allocation3] sm:$0x1] %vm61_vm0, %v60_v9 }
  0xb8   :  { %73 = dma.vmem_to_hbm [thread:$0]  %s69_s9, 16, %s71_s12, [#allocation4]  }
  0xb9   :  { %112 = dma.done.wait [#allocation4], 16  }
  0xba   :  { %113 = vsyncadd [#allocation4], 4294967280 }
  0xbb   :  { %78 = vsyncpa [#allocation4], 1 }

</bundles_post_ra>
